<compile_context>
chip_gen: v6e
topology: v6e:2x2x1
jax: 0.10.0
libtpu: 0.0.40
codegen_flags: <defaults>
</compile_context>

<pallas_src>
import jax
import jax.numpy as jnp
from jax.experimental import pallas as pl
from jax.experimental.pallas import tpu as pltpu


def _gate_kernel(x_ref, s_ref, wm_ref, wi_ref, wf_ref,
                 bm_ref, bi_ref, bf_ref, o_ref):
    # x_ref : (tm, D) f32      wm/wi/wf_ref : (D, tn) bf16
    # s_ref : (tm, tn)         bm/bi/bf_ref : (1, tn) f32
    # Cast x to bf16 in-kernel (VPU slack under the MXU) instead of a separate
    # wrapper-side HBM cast pass.
    x = x_ref[...].astype(jnp.bfloat16)
    gz = jnp.dot(x, wm_ref[...], preferred_element_type=jnp.float32) + bm_ref[...]
    gi = jnp.dot(x, wi_ref[...], preferred_element_type=jnp.float32) + bi_ref[...]
    gf = jnp.dot(x, wf_ref[...], preferred_element_type=jnp.float32) + bf_ref[...]
    z = jnp.tanh(gz)
    i = jax.nn.sigmoid(gi)          # "-1" offset pre-folded into bi
    f = jax.nn.sigmoid(gf)          # "+1" offset pre-folded into bf
    # TODO(synk): if profiling on v5e shows the EUP binding, compute the
    # sigmoids as 0.5*(tanh(0.5*g)+1) with the 0.5 folded into Wi/Wf, bi/bf.
    s = s_ref[...].astype(jnp.float32)
    o_ref[...] = (s * f + z * i).astype(o_ref.dtype)


def _round_up(x, m):
    return (x + m - 1) // m * m


def prepare_params(params):
    """One-time (parameter-load-time) prep: cast weights to bf16, fold the
    -1/+1 gate offsets into the biases, reshape biases to (1, D)."""
    return {
        "wm": params["wm"].astype(jnp.bfloat16),
        "wi": params["wi"].astype(jnp.bfloat16),
        "wf": params["wf"].astype(jnp.bfloat16),
        "bm": params["bm"].reshape(1, -1).astype(jnp.float32),
        "bi": (params["bi"] - 1.0).reshape(1, -1).astype(jnp.float32),
        "bf": (params["bf"] + 1.0).reshape(1, -1).astype(jnp.float32),
    }


def recurrent_state_gate(x, state, prepared, *, tm=512, tn=256, out_dtype=None):
    """x, state: (B, S, D). `prepared` = prepare_params(raw_params)."""
    B, S, D = x.shape
    assert state.shape == (B, S, D)
    M = B * S
    if out_dtype is None:
        out_dtype = state.dtype

    x2 = x.reshape(M, D)            # metadata-only reshape, no HBM pass
    s2 = state.reshape(M, D)

    # ---- row tile -------------------------------------------------------
    # Big tile to amortize ~0.35us/step overhead, but keep the f32 (tm, D) x
    # tile to ~4 MiB per buffer, and guarantee >= 2 row tiles so the
    # "parallel" axis shards across v7x's two TensorCores.
    tm_eff = min(tm, max(8, (4 << 20) // (D * 4) // 8 * 8))
    tm_eff = min(tm_eff, _round_up(M, 8))
    if M > 8 and pl.cdiv(M, tm_eff) < 2:
        tm_eff = _round_up(pl.cdiv(M, 2), 8)
    grid_m = pl.cdiv(M, tm_eff)

    # ---- gate-column tile -------------------------------------------------
    # Small/medium D: one full-width column tile (weights resident, fetched
    # once). Large D: stream 256-wide weight column tiles (matches v6e/v7x
    # 256x256 MXU, keeps the working set VMEM-sized on v7x's 64 MiB).
    tn_eff = D if D <= 1024 else tn
    grid_n = pl.cdiv(D, tn_eff)
    # TODO(synk): add a K (contraction) grid axis with a VMEM f32 accumulator
    # + pl.when init/finalize for extremely large D where the (tm, D) x tile
    # itself no longer fits comfortably.

    x_spec = pl.BlockSpec((tm_eff, D), lambda r, c: (r, 0))
    st_spec = pl.BlockSpec((tm_eff, tn_eff), lambda r, c: (r, c))
    w_spec = pl.BlockSpec((D, tn_eff), lambda r, c: (0, c))
    b_spec = pl.BlockSpec((1, tn_eff), lambda r, c: (0, c))
    o_spec = pl.BlockSpec((tm_eff, tn_eff), lambda r, c: (r, c))

    # ---- VMEM budget: actual tile footprint + headroom, clamped to HW -----
    bx = jnp.dtype(x.dtype).itemsize
    bs = jnp.dtype(state.dtype).itemsize
    bo = jnp.dtype(out_dtype).itemsize
    need = (2 * tm_eff * D * bx                 # x tile (double buffered)
            + 2 * tm_eff * tn_eff * bs          # state tile
            + 2 * tm_eff * tn_eff * bo          # out tile
            + 2 * 3 * D * tn_eff * 2            # bf16 weight tiles
            + 2 * 3 * tn_eff * 4                # bias tiles
            + 4 * tm_eff * tn_eff * 4)          # f32 gate temporaries
    try:
        cap = int(pltpu.get_tpu_info().vmem_capacity_bytes)
    except Exception:  # noqa: BLE001 - conservative fallback (v7x = 64 MiB)
        cap = 64 << 20
    cap = (cap * 7) // 8                        # leave headroom for Mosaic scratch
    vmem_limit = int(min(cap, max(need + (16 << 20), 32 << 20)))

    out2 = pl.pallas_call(
        _gate_kernel,
        out_shape=jax.ShapeDtypeStruct((M, D), out_dtype),
        grid_spec=pltpu.PrefetchScalarGridSpec(
            num_scalar_prefetch=0,
            grid=(grid_m, grid_n),
            in_specs=[x_spec, st_spec,
                      w_spec, w_spec, w_spec,
                      b_spec, b_spec, b_spec],
            out_specs=o_spec,
        ),
        compiler_params=pltpu.CompilerParams(
            dimension_semantics=("parallel", "arbitrary"),
            vmem_limit_bytes=vmem_limit,
        ),
    )(x2, s2,
      prepared["wm"], prepared["wi"], prepared["wf"],
      prepared["bm"], prepared["bi"], prepared["bf"])

    return out2.reshape(B, S, D)


def init_params(key, dim):
    """Deterministic synthetic init (uniform like torch Linear default)."""
    ks = jax.random.split(key, 6)
    bound = 1.0 / jnp.sqrt(dim)
    u = lambda k, shape: jax.random.uniform(k, shape, jnp.float32, -bound, bound)
    return {
        # stored as (in, out) == torch W^T
        "wm": u(ks[0], (dim, dim)),
        "bm": u(ks[1], (dim,)),
        "wi": u(ks[2], (dim, dim)),
        "bi": u(ks[3], (dim,)),
        "wf": u(ks[4], (dim, dim)),
        "bf": u(ks[5], (dim,)),
    }


def _ref_forward(x, state, p):
    z = jnp.tanh(x @ p["wm"] + p["bm"])
    i = jax.nn.sigmoid(x @ p["wi"] + p["bi"] - 1.0)
    f = jax.nn.sigmoid(x @ p["wf"] + p["bf"] + 1.0)
    return state * f + z * i


if __name__ == "__main__":
    B, S, D = 2, 8, 32
    key = jax.random.PRNGKey(0)
    kx, ks, kp = jax.random.split(key, 3)

    x = jax.random.normal(kx, (B, S, D), jnp.float32)
    state = jax.random.normal(ks, (B, S, D), jnp.float32)
    params = init_params(kp, D)
    prepared = prepare_params(params)   # one-time, parameter-load-time prep

    out = recurrent_state_gate(x, state, prepared)
    out = jax.block_until_ready(out)

    ref = _ref_forward(x, state, params)
    assert out.shape == (B, S, D)
    # bf16 MXU inputs with f32 accumulation -> compare at bf16-level tolerance
    assert jnp.allclose(out, ref, atol=2e-2, rtol=2e-2), "mismatch vs reference"

    print("KERNEL_OK")
</pallas_src>

<mosaic_0001>
module attributes {stable_mosaic.version = 11 : i64} {
  func.func @_gate_kernel(%arg0: i32, %arg1: i32, %arg2: memref<8x32xf32, #tpu.memory_space<vmem>>, %arg3: memref<8x32xf32, #tpu.memory_space<vmem>>, %arg4: memref<32x32xbf16, #tpu.memory_space<vmem>>, %arg5: memref<32x32xbf16, #tpu.memory_space<vmem>>, %arg6: memref<32x32xbf16, #tpu.memory_space<vmem>>, %arg7: memref<1x32xf32, #tpu.memory_space<vmem>>, %arg8: memref<1x32xf32, #tpu.memory_space<vmem>>, %arg9: memref<1x32xf32, #tpu.memory_space<vmem>>, %arg10: memref<8x32xf32, #tpu.memory_space<vmem>>) attributes {dimension_semantics = [#tpu.dimension_semantics<parallel>, #tpu.dimension_semantics<arbitrary>], iteration_bounds = array<i64: 2, 1>, scalar_prefetch = 0 : i64, scratch_operands = 0 : i64, tpu.core_type = #tpu.core_type<tc>, window_params = [{transform_indices = @transform_0, window_bounds = array<i64: 8, 32>}, {transform_indices = @transform_1, window_bounds = array<i64: 8, 32>}, {transform_indices = @transform_2, window_bounds = array<i64: 32, 32>}, {transform_indices = @transform_3, window_bounds = array<i64: 32, 32>}, {transform_indices = @transform_4, window_bounds = array<i64: 32, 32>}, {transform_indices = @transform_5, window_bounds = array<i64: 1, 32>}, {transform_indices = @transform_6, window_bounds = array<i64: 1, 32>}, {transform_indices = @transform_7, window_bounds = array<i64: 1, 32>}, {transform_indices = @transform_8, window_bounds = array<i64: 8, 32>}]} {
    %c0 = arith.constant 0 : index
    %c0_0 = arith.constant 0 : index
    %0 = vector.load %arg2[%c0, %c0_0] : memref<8x32xf32, #tpu.memory_space<vmem>>, vector<8x32xf32>
    %1 = arith.truncf %0 : vector<8x32xf32> to vector<8x32xbf16>
    %c0_1 = arith.constant 0 : index
    %c0_2 = arith.constant 0 : index
    %2 = vector.load %arg4[%c0_1, %c0_2] : memref<32x32xbf16, #tpu.memory_space<vmem>>, vector<32x32xbf16>
    %cst = arith.constant dense<0.000000e+00> : vector<8x32xf32>
    %3 = tpu.matmul %1, %2, %cst {dimension_numbers = #tpu.dot_dimension_numbers<[1], [0], [0], [1], [0, 0, 1, 1], [], []>} : vector<8x32xbf16>, vector<32x32xbf16>, vector<8x32xf32> -> vector<8x32xf32>
    %c0_3 = arith.constant 0 : index
    %c0_4 = arith.constant 0 : index
    %4 = vector.load %arg7[%c0_3, %c0_4] : memref<1x32xf32, #tpu.memory_space<vmem>>, vector<1x32xf32>
    %5 = vector.broadcast %4 : vector<1x32xf32> to vector<8x32xf32>
    %6 = arith.addf %3, %5 : vector<8x32xf32>
    %c0_5 = arith.constant 0 : index
    %c0_6 = arith.constant 0 : index
    %7 = vector.load %arg5[%c0_5, %c0_6] : memref<32x32xbf16, #tpu.memory_space<vmem>>, vector<32x32xbf16>
    %cst_7 = arith.constant dense<0.000000e+00> : vector<8x32xf32>
    %8 = tpu.matmul %1, %7, %cst_7 {dimension_numbers = #tpu.dot_dimension_numbers<[1], [0], [0], [1], [0, 0, 1, 1], [], []>} : vector<8x32xbf16>, vector<32x32xbf16>, vector<8x32xf32> -> vector<8x32xf32>
    %c0_8 = arith.constant 0 : index
    %c0_9 = arith.constant 0 : index
    %9 = vector.load %arg8[%c0_8, %c0_9] : memref<1x32xf32, #tpu.memory_space<vmem>>, vector<1x32xf32>
    %10 = vector.broadcast %9 : vector<1x32xf32> to vector<8x32xf32>
    %11 = arith.addf %8, %10 : vector<8x32xf32>
    %c0_10 = arith.constant 0 : index
    %c0_11 = arith.constant 0 : index
    %12 = vector.load %arg6[%c0_10, %c0_11] : memref<32x32xbf16, #tpu.memory_space<vmem>>, vector<32x32xbf16>
    %cst_12 = arith.constant dense<0.000000e+00> : vector<8x32xf32>
    %13 = tpu.matmul %1, %12, %cst_12 {dimension_numbers = #tpu.dot_dimension_numbers<[1], [0], [0], [1], [0, 0, 1, 1], [], []>} : vector<8x32xbf16>, vector<32x32xbf16>, vector<8x32xf32> -> vector<8x32xf32>
    %c0_13 = arith.constant 0 : index
    %c0_14 = arith.constant 0 : index
    %14 = vector.load %arg9[%c0_13, %c0_14] : memref<1x32xf32, #tpu.memory_space<vmem>>, vector<1x32xf32>
    %15 = vector.broadcast %14 : vector<1x32xf32> to vector<8x32xf32>
    %16 = arith.addf %13, %15 : vector<8x32xf32>
    %17 = math.tanh %6 : vector<8x32xf32>
    %18 = arith.negf %11 : vector<8x32xf32>
    %19 = math.exp %18 : vector<8x32xf32>
    %cst_15 = arith.constant 1.000000e+00 : f32
    %20 = vector.broadcast %cst_15 : f32 to vector<8x32xf32>
    %21 = arith.addf %20, %19 : vector<8x32xf32>
    %22 = arith.divf %20, %21 : vector<8x32xf32>
    %23 = arith.negf %16 : vector<8x32xf32>
    %24 = math.exp %23 : vector<8x32xf32>
    %cst_16 = arith.constant 1.000000e+00 : f32
    %25 = vector.broadcast %cst_16 : f32 to vector<8x32xf32>
    %26 = arith.addf %25, %24 : vector<8x32xf32>
    %27 = arith.divf %25, %26 : vector<8x32xf32>
    %c0_17 = arith.constant 0 : index
    %c0_18 = arith.constant 0 : index
    %28 = vector.load %arg3[%c0_17, %c0_18] : memref<8x32xf32, #tpu.memory_space<vmem>>, vector<8x32xf32>
    %29 = arith.mulf %28, %27 : vector<8x32xf32>
    %30 = arith.mulf %17, %22 : vector<8x32xf32>
    %31 = arith.addf %29, %30 : vector<8x32xf32>
    %c0_19 = arith.constant 0 : index
    %c0_20 = arith.constant 0 : index
    %32 = vector.load %arg10[%c0_19, %c0_20] : memref<8x32xf32, #tpu.memory_space<vmem>>, vector<8x32xf32>
    tpu.vector_store %arg10[%c0_19, %c0_20], %31 {strides = array<i32>} : memref<8x32xf32, #tpu.memory_space<vmem>>, vector<8x32xf32>,
    return
  }
  func.func @transform_0(%arg0: i32, %arg1: i32) -> (i32, i32) {
    %c0_i32 = arith.constant 0 : i32
    %c0_i32_0 = arith.constant 0 : i32
    return %arg0, %c0_i32 : i32, i32
  }
  func.func @transform_1(%arg0: i32, %arg1: i32) -> (i32, i32) {
    %c0_i32 = arith.constant 0 : i32
    return %arg0, %arg1 : i32, i32
  }
  func.func @transform_2(%arg0: i32, %arg1: i32) -> (i32, i32) {
    %c0_i32 = arith.constant 0 : i32
    %c0_i32_0 = arith.constant 0 : i32
    return %c0_i32, %arg1 : i32, i32
  }
  func.func @transform_3(%arg0: i32, %arg1: i32) -> (i32, i32) {
    %c0_i32 = arith.constant 0 : i32
    %c0_i32_0 = arith.constant 0 : i32
    return %c0_i32, %arg1 : i32, i32
  }
  func.func @transform_4(%arg0: i32, %arg1: i32) -> (i32, i32) {
    %c0_i32 = arith.constant 0 : i32
    %c0_i32_0 = arith.constant 0 : i32
    return %c0_i32, %arg1 : i32, i32
  }
  func.func @transform_5(%arg0: i32, %arg1: i32) -> (i32, i32) {
    %c0_i32 = arith.constant 0 : i32
    %c0_i32_0 = arith.constant 0 : i32
    return %c0_i32, %arg1 : i32, i32
  }
  func.func @transform_6(%arg0: i32, %arg1: i32) -> (i32, i32) {
    %c0_i32 = arith.constant 0 : i32
    %c0_i32_0 = arith.constant 0 : i32
    return %c0_i32, %arg1 : i32, i32
  }
  func.func @transform_7(%arg0: i32, %arg1: i32) -> (i32, i32) {
    %c0_i32 = arith.constant 0 : i32
    %c0_i32_0 = arith.constant 0 : i32
    return %c0_i32, %arg1 : i32, i32
  }
  func.func @transform_8(%arg0: i32, %arg1: i32) -> (i32, i32) {
    %c0_i32 = arith.constant 0 : i32
    return %arg0, %arg1 : i32, i32
  }
}

</mosaic_0001>

<bundles_post_ra>
// kernel: tpu_custom_call.1
= control target key start
LH: loop header
LB: loop body
LE: loop exit
PB: predicated region body
PF: predicated region fallthrough
CT: control target
= control target key end

     0   :  { %s1581_s0 = inlined_call_operand.hbm [shape: f32[16,32], index: 0, kind: input, shape index: {}]   ;;  %s1582_s1 = inlined_call_operand.hbm [shape: f32[16,32], index: 1, kind: input, shape index: {}]   ;;  %s1583_s2 = inlined_call_operand.hbm [shape: bf16[32,32], index: 2, kind: input, shape index: {}]   ;;  %s1584_s3 = inlined_call_operand.hbm [shape: bf16[32,32], index: 3, kind: input, shape index: {}]   ;;  %s1585_s4 = inlined_call_operand.hbm [shape: bf16[32,32], index: 4, kind: input, shape index: {}]   ;;  %s1586_s5 = inlined_call_operand.vmem [shape: f32[1,32], index: 5, kind: input, shape index: {}]   ;;  %s1587_s6 = inlined_call_operand.vmem [shape: f32[1,32], index: 6, kind: input, shape index: {}]   ;;  %s1588_s7 = inlined_call_operand.vmem [shape: f32[1,32], index: 7, kind: input, shape index: {}]   ;;  %s1589_s8 = inlined_call_operand.hbm [shape: f32[16,32], index: 8, kind: output, shape index: {}]  }
   0x1   :  { %1594 = sst [smem:[#allocation19_spill]] %s1581_s0 }
   0x2   :  { %1595 = sst [smem:[#allocation20_spill]] %s1583_s2 }
   0x3   :  { %1596 = sst [smem:[#allocation21_spill]] %s1584_s3 }
   0x4   :  { %1597 = sst [smem:[#allocation22_spill]] %s1585_s4 }
   0x5   :  { %13 = vsyncpa [#allocation3], 0 }
   0x6   :  { %15 = vsyncpa [#allocation3 + $0x1], 0 }
   0x7   :  { %16 = vsyncpa [#allocation6], 0 }
   0x8   :  { %18 = vsyncpa [#allocation6 + $0x1], 0 }
   0x9   :  { %19 = vsyncpa [#allocation9], 0 }
   0xa   :  { %20 = vsyncpa [#allocation4], 0 }
   0xb   :  { %22 = vsyncpa [#allocation4 + $0x1], 0  ;;  %s1356_s27 = smov 0   ;;  %s1358_s28 = smov 0  }
   0xc   :  { %s1360_s29 = smov 0   ;;  %s1362_s30 = smov 0  }
   0xd   :  { %s1364_s9 = smov 0   ;;  %s1366_s10 = smov 0  }
   0xe LB: > { %s1387_s11 = sadd.s32 4294967295, %s1299_s10   ;;  %s884_s12 = sadd.s32 4294967294, %s1299_s10   ;;  %s1299_s10 = sphi %s1366_s10, %s28_s10   ;;  %s1295_s9 = sphi %s1364_s9, %s1624_s9   ;;  %s1291_s30 = sphi %s1362_s30, %s1623_s30   ;;  %s1287_s29 = sphi %s1360_s29, %s1622_s29   ;;  %s1283_s28 = sphi %s1358_s28, %s1621_s28   ;;  %s1279_s27 = sphi %s1356_s27, %s1620_s27  }
   0xf   : > { %p60_p0 = scmp.ne.s32.totalorder %s1283_s28, %s1279_s27  ;;  %p1590_p1 = scmp.eq.s32.totalorder %s1387_s11, 0 }
  0x10   : > { %p276_p3 = scmp.eq.s32.totalorder %s884_s12, 1  ;;  %p885_p5 = scmp.ge.s32.totalorder %s1299_s10, 1 }
  0x11   : > { %p1396_p4 = por %p1590_p1, %p60_p0  ;;  %p283_p7 = scmp.lt.s32.totalorder %s1299_s10, 3 }
  0x12   : > { %p1401_p6 = por %p276_p3, %p60_p0  ;;  %s1301_s16 = smov [#allocation7]  }
  0x13   : > { %s1598_s13 = scalar_select %p1396_p4, 1, 0 }
  0x14   : > { %s1599_s14 = scalar_select %p1401_p6, 1, 0 }
  0x15   : > { %p1406_p8 = pnand %p885_p5, %p283_p7  ;;  %s297_s17 = sshll.u32 %s1301_s16, 4  ;;  %s298_s17 = int_to_ptr.vmem [resolvable:$true] %s297_s17 }
  0x16   : > { %1600 = sst [smem:[#allocation17_spill]] %s1599_s14  ;;  %s1302_s19 = smov [#allocation8]  }
  0x17   : > { %p973_p9 = pneg %p1406_p8  ;;  %s312_s20 = sshll.u32 %s1302_s19, 4  ;;  %s313_s20 = int_to_ptr.vmem [resolvable:$true] %s312_s20 }
  0x18   : > { %s1303_s21 = smov [#allocation10]   ;;  %s1084_s23 = scalar_lea.vmem %s298_s17, 256 }
  0x19   : > { %p1415_p11 = pnand %p973_p9, %p1590_p1  ;;  %s327_s22 = sshll.u32 %s1303_s21, 4  ;;  %s328_s22 = int_to_ptr.vmem [resolvable:$true] %s327_s22 }
  0x1a   : > { %p1085_p13 = scmp.ne.s32.totalorder %s298_s17, %s1084_s23  ;;  %p1092_p5 = scmp.lt.s32.totalorder %s298_s17, %s298_s17 }
  0x1b   : > { %p1075_p12 = pneg %p1415_p11  ;;  %p1093_p7 = scmp.lt.s32.totalorder %s1084_s23, %s1084_s23 }
  0x1d   : > { %p1087_p0 = pnand %p1085_p13, %p1075_p12  ;;  %p1094_p9 = por %p1093_p7, %p1092_p5 }
  0x1f   : > { %p1088_p3 = pneg %p1087_p0 }
  0x21   : > { %p1095_p10 = pnand %p1094_p9, %p1088_p3 }
  0x23   : > { %1098 = shalt.err (!%p1095_p10)
}
  0x24   : > { %s1304_s24 = smov 64   ;;  %s1305_s25 = smov 4  }
  0x25   : > { %s1603_s2 = sld [smem:[#allocation20_spill]]  ;;  %s1110_s16 = scalar_lea.vmem %s313_s20, 256 }
  0x26   : > { %p1111_p1 = scmp.ne.s32.totalorder %s313_s20, %s1110_s16  ;;  %p1118_p2 = scmp.lt.s32.totalorder %s313_s20, %s313_s20 }
  0x27   : > { %p1119_p6 = scmp.lt.s32.totalorder %s1110_s16, %s1110_s16 }
  0x28   : > { %p1113_p13 = pnand %p1111_p1, %p1075_p12 }
  0x29   : > { %p1120_p5 = por %p1119_p6, %p1118_p2 }
  0x2a   : > { %p1114_p0 = pneg %p1113_p13 }
  0x2b   : > { %976 = dma.hbm_to_vmem [thread:$0]  (!%p1415_p11), %s1603_s2, 256, %s298_s17, [#allocation6], %s1304_s24, %s1304_s24, %s1305_s25  }
  0x2c   : > { %p1121_p3 = pnand %p1120_p5, %p1114_p0 }
  0x2e   : > { %1124 = shalt.err (!%p1121_p3)
}
  0x2f   : > { %s1604_s3 = sld [smem:[#allocation21_spill]]  ;;  %s1136_s17 = scalar_lea.vmem %s328_s22, 256 }
  0x30   : > { %p1137_p10 = scmp.ne.s32.totalorder %s328_s22, %s1136_s17  ;;  %p1144_p9 = scmp.lt.s32.totalorder %s328_s22, %s328_s22 }
  0x31   : > { %p1145_p13 = scmp.lt.s32.totalorder %s1136_s17, %s1136_s17 }
  0x32   : > { %p1139_p7 = pnand %p1137_p10, %p1075_p12 }
  0x33   : > { %p1146_p4 = por %p1145_p13, %p1144_p9 }
  0x34   : > { %p1140_p1 = pneg %p1139_p7 }
  0x35   : > { %979 = dma.hbm_to_vmem [thread:$0]  (!%p1415_p11), %s1604_s3, 256, %s313_s20, [#allocation9], %s1304_s24, %s1304_s24, %s1305_s25  }
  0x36   : > { %p1147_p2 = pnand %p1146_p4, %p1140_p1 }
  0x38   : > { %1150 = shalt.err (!%p1147_p2)
}
  0x39   : > { %s1605_s4 = sld [smem:[#allocation22_spill]]  ;;  %s47_s20 = sadd.s32 1, %s1287_s29 }
  0x3a   : > { %s40_s12 = sadd.s32 1, %s1295_s9  ;;  %p54_p4 = scmp.ne.s32.totalorder %s1287_s29, %s1283_s28 }
  0x3b   : > { %p42_p6 = scmp.ge.s32.totalorder %s40_s12, 2  ;;  %p55_p12 = scmp.eq.s32.totalorder %s1299_s10, 0 }
  0x3c   : > { %p1606_p0 = scmp.eq.s32.totalorder %s1387_s11, 1  ;;  %p997_p3 = scmp.lt.s32.totalorder %s1299_s10, 2 }
  0x3d   : > { %s1626_s12 = smov (%p42_p6, %s40_s12), 0  ;;  %p56_p10 = por %p55_p12, %p54_p4 }
  0x3e   : > { %p1452_p5 = por %p1606_p0, %p54_p4  ;;  %1608 = sst [smem:[#allocation18_spill]] %s1626_s12 }
  0x3f   : > { %982 = dma.hbm_to_vmem [thread:$0]  (!%p1415_p11), %s1605_s4, 256, %s328_s22, [#allocation9], %s1304_s24, %s1304_s24, %s1305_s25  }
  0x40   : > { %s359_s16 = sand.u32 1, %s1287_s29   ;;  %s44_s19 = ssub.s32 %s1295_s9, %s1626_s12 }
  0x41   : > { %p45_p11 = scmp.eq.s32.totalorder %s44_s19, 0  ;;  %s893_s22 = sshll.u32 %s359_s16, 3 }
  0x42   : > { %s894_s24 = sshll.u32 %s1295_s9, 7  ;;  %s1609_s0 = sld [smem:[#allocation19_spill]] }
  0x43   : > { %s1464_s25 = scalar_select %p45_p11, %s1287_s29, %s47_s20  }
  0x44   : > { %s363_s26 = scalar_lea.vmem [#allocation2], %s893_s22  ;;  %p1471_p7 = pnand %p997_p3, %p56_p10 }
  0x45   : > { %s370_s2 = sshll.u32 %s363_s26, 4  ;;  %s1478_s19 = scalar_lea.hbm %s1582_s1, %s894_s24  ;;  %s371_s2 = int_to_ptr.vmem [resolvable:$true] %s370_s2 }
  0x46   : > { %s377_s20 = sand.u32 1, %s1299_s10   ;;  %s360_s12 = scalar_lea.sflag [#allocation3], %s359_s16 }
  0x47   : > { %p1153_p1 = pneg %p1471_p7  ;;  %s1164_s21 = scalar_lea.vmem %s371_s2, 128 }
  0x48   : > { %s368_s23 = scalar_lea.hbm %s1609_s0, %s894_s24  ;;  %p1165_p9 = scmp.ne.s32.totalorder %s371_s2, %s1164_s21 }
  0x49   : > { %s1306_s17 = smov [#allocation2]  }
  0x4a   : > { %p1167_p13 = pnand %p1165_p9, %p1153_p1  ;;  %s1169_s26 = sshll.u32 %s1306_s17, 4  ;;  %s1170_s26 = int_to_ptr.vmem [resolvable:$false] %s1169_s26 }
  0x4b   : > { %s1171_s0 = scalar_lea.vmem %s1170_s26, 256  ;;  %p1172_p4 = scmp.lt.s32.totalorder %s371_s2, %s1170_s26 }
  0x4c   : > { %p1168_p2 = pneg %p1167_p13  ;;  %p1173_p6 = scmp.lt.s32.totalorder %s1171_s0, %s1164_s21 }
  0x4e   : > { %p1174_p12 = por %p1173_p6, %p1172_p4 }
  0x50   : > { %p1175_p0 = pnand %p1174_p12, %p1168_p2 }
  0x52   : > { %1178 = shalt.err (!%p1175_p0)
}
  0x53   : > { %986 = dma.hbm_to_vmem [thread:$0]  (!%p1471_p7), %s368_s23, 128, %s371_s2, %s360_s12  }
  0x54   : > { %s381_s4 = scalar_lea.vmem [#allocation5], %s893_s22  ;;  %s378_s16 = scalar_lea.sflag [#allocation6], %s377_s20 }
  0x55   : > { %s389_s14 = sshll.u32 %s381_s4, 4  ;;  %s1307_s17 = smov [#allocation5]   ;;  %s390_s14 = int_to_ptr.vmem [resolvable:$true] %s389_s14 }
  0x56   : > { %s1192_s24 = scalar_lea.vmem %s390_s14, 128  ;;  %s1197_s26 = sshll.u32 %s1307_s17, 4  ;;  %s1198_s26 = int_to_ptr.vmem [resolvable:$false] %s1197_s26 }
  0x57   : > { %p1193_p3 = scmp.ne.s32.totalorder %s390_s14, %s1192_s24  ;;  %s1199_s0 = scalar_lea.vmem %s1198_s26, 256 }
  0x58   : > { %p1200_p9 = scmp.lt.s32.totalorder %s390_s14, %s1198_s26  ;;  %p1201_p13 = scmp.lt.s32.totalorder %s1199_s0, %s1192_s24 }
  0x59   : > { %p1195_p10 = pnand %p1193_p3, %p1153_p1 }
  0x5a   : > { %p1202_p2 = por %p1201_p13, %p1200_p9 }
  0x5b   : > { %p1196_p11 = pneg %p1195_p10 }
  0x5d   : > { %p1203_p4 = pnand %p1202_p2, %p1196_p11 }
  0x5f   : > { %1206 = shalt.err (!%p1203_p4)
}
  0x60   : > { %989 = dma.hbm_to_vmem [thread:$0]  (!%p1471_p7), %s1478_s19, 128, %s390_s14, %s378_s16  }
  0x61   : > { %398 = sbr.rel (%p1406_p8) target bundleno = 375 (0x177), region = 52  ;;  %s1497_s2 = sand.u32 (!%p1406_p8), 1, %s1283_s28  }
  0x62   : > { %s1500_s12 = sshll.u32 (!%p1406_p8), %s1497_s2, 3  ;;  %s401_s22 = scalar_lea.sflag (!%p1406_p8), [#allocation3], %s1497_s2 }
  0x63   : > { %s404_s23 = scalar_lea.vmem (!%p1406_p8), [#allocation2], %s1500_s12  ;;  %p1611_p1 = scmp.ne.s32.totalorder (!%p1406_p8), %s1598_s13, 0 }
  0x66   : > { %1258 = dma.done.wait (%p1611_p1), %s401_s22, 128  }
  0x67   : > { %1260 = vsyncadd (%p1611_p1), %s401_s22, 4294967168  ;;  %s409_s3 = sand.u32 1, %s1387_s11   ;;  %s413_s19 = scalar_lea.vmem [#allocation5], %s1500_s12 }
  0x68   : > { %s410_s15 = scalar_lea.sflag [#allocation6], %s409_s3 }
  0x69   : > { %1262 = dma.done.wait (%p1611_p1), %s410_s15, 128  }
  0x6a   : > { %1264 = vsyncadd (%p1611_p1), %s410_s15, 4294967168  ;;  %p1612_p8 = scmp.eq.s32.totalorder %s1387_s11, 0 }
  0x6c   : > { %1266 = dma.done.wait (%p1612_p8), [#allocation6], 256   ;;  %p1613_p7 = pmov %p1612_p8 }
  0x6e   : > { %1268 = vsyncadd (%p1613_p7), [#allocation6], 4294967040  ;;  %p1614_p6 = pmov %p1613_p7 }
  0x70   : > { %1270 = dma.done.wait (%p1614_p6), [#allocation9], 512   ;;  %p1615_p12 = pmov %p1614_p6 }
  0x71   : > { %v1308_v0 = vmov 0.0   ;;  %vm1309_vm0 = vmmov 0   ;;  %v1057_v1 = vld [vmem:[#allocation7 + $0x8] sm:$0xff]   ;;  %v1058_v2 = vld [vmem:[#allocation8 + $0x8] sm:$0xff]   ;;  %v1059_v3 = vld [vmem:[#allocation7] sm:$0xff]   ;;  %vm507_vm1 = vcmask 261120  }
  0x72   : > { %1272 = vsyncadd (%p1615_p12), [#allocation9], 4294966784  ;;  %931 = vmatprep.subr.bf16.mxu0 %v1308_v0  ;;  %939 = vmatprep.subr.bf16.mxu1 %v1308_v0  ;;  %v1060_v4 = vld [vmem:[#allocation8] sm:$0xff]   ;;  %v482_v5 = vld [vmem:[%s404_s23] sm:$0xff]  ;;  %s919_s16 = sshll.u32 %s1291_s30, 7  ;;  %s471_s24 = scalar_lea.vmem [#allocation11], %s1500_s12 }
  0x73   : > { %935 = vmatprep.mubr.msk.bf16.mxu0 %vm1309_vm0, %v1308_v0  ;;  %943 = vmatprep.mubr.msk.bf16.mxu1 %vm1309_vm0, %v1308_v0  ;;  %v483_v6 = vpack.c.bf16 %v482_v5, %v482_v5  ;;  %v1061_v7 = vld [vmem:[#allocation10 + $0x8] sm:$0xff]   ;;  %v1062_v8 = vld [vmem:[#allocation10] sm:$0xff]   ;;  %v690_v34 = vld [vmem:[%s413_s19] sm:$0xff]  ;;  %s710_s17 = sshll.u32 %s471_s24, 4  ;;  %s708_s22 = scalar_lea.hbm %s1589_s8, %s919_s16  ;;  %s711_s17 = int_to_ptr.vmem [resolvable:$true] %s710_s17 }
  0x74   : > { %932 = vmatpush3.bf16.msra.mxu0 %v1057_v1  ;;  %940 = vmatpush3.bf16.msra.mxu1 %v1058_v2  ;;  %v908_v9 = vld [vmem:[%s1587_s6] ss:$0 sm:$0xff]  ;;  %s696_s23 = scalar_lea.sflag [#allocation4], %s1497_s2  ;;  %s1207_s3 = scalar_lea.vmem %s711_s17, 128 }
  0x75   : > { %933 = vmatprep.subr.bf16.mxu0 %v1308_v0  ;;  %941 = vmatprep.subr.bf16.mxu1 %v1308_v0  ;;  %v912_v19 = vld [vmem:[%s1588_s7] ss:$0 sm:$0xff]  ;;  %p1208_p0 = scmp.ne.s32.totalorder %s711_s17, %s1207_s3  ;;  %s1310_s15 = smov [#allocation11]  }
  0x76   : > { %v904_v28 = vld [vmem:[%s1586_s5] ss:$0 sm:$0xff]  ;;  %s1211_s30 = sshll.u32 %s1310_s15, 4  ;;  %s1212_s30 = int_to_ptr.vmem [resolvable:$false] %s1211_s30 }
  0x77   : > { %p1209_p3 = pnand %p1208_p0, %p1452_p5  ;;  %s1213_s12 = scalar_lea.vmem %s1212_s30, 256 }
  0x78   : > { %934 = vmatpush3.bf16.msra.mxu0 %v1059_v3  ;;  %942 = vmatpush3.bf16.msra.mxu1 %v1060_v4  ;;  %p1214_p11 = scmp.lt.s32.totalorder %s711_s17, %s1212_s30  ;;  %p1215_p9 = scmp.lt.s32.totalorder %s1213_s12, %s1207_s3 }
  0x79   : > { %947 = vmatprep.subr.bf16.mxu0 %v1308_v0  ;;  %p1210_p10 = pneg %p1209_p3 }
  0x7a   : > { %p1216_p13 = por %p1215_p9, %p1214_p11 }
  0x7b   : > { %936 = vmatmul.mubr.msk.bf16.vlgmr.msra.gmra.mxu0 %vm507_vm1, %v483_v6  ;;  %944 = vmatmul.mubr.msk.bf16.vlgmr.msra.gmra.mxu1 %vm507_vm1, %v483_v6 }
  0x7c   : > { %948 = vmatpush3.bf16.msra.mxu0 %v1061_v7  ;;  %951 = vmatprep.mubr.msk.bf16.mxu0 %vm1309_vm0, %v1308_v0  ;;  %p1217_p2 = pnand %p1216_p13, %p1210_p10 }
  0x7d   : > { %949 = vmatprep.subr.bf16.mxu0 %v1308_v0 }
  0x80   : > { %950 = vmatpush3.bf16.msra.mxu0 %v1062_v8 }
  0x83   : > { %952 = vmatmul.mubr.msk.bf16.vlgmr.msra.gmra.mxu0 %vm507_vm1, %v483_v6 }
 0x13b   : > { %v545_v10 = vpop.f32.mrf.mxu0  ;;  %v608_v11 = vpop.f32.mrf.mxu1 }
 0x13c   : > { %v609_v12 = vadd.f32 %v908_v9, %v608_v11  ;;  %v546_v30 = vadd.f32 %v904_v28, %v545_v10 }
 0x13d   : > { %v937_v13 = vpop.f32.mrf.mxu0  ;;  %v945_v14 = vpop.f32.mrf.mxu1 }
 0x13e   : > { %v916_v15 = vmul.f32 -1.442695, %v609_v12 }
 0x13f   : > { %v548_v16 = vpop.f32.mrf.mxu0  ;;  %v611_v17 = vpop.f32.mrf.mxu1 }
 0x140   : > { %1063 = vpow2.f32 %v916_v15 }
 0x141   : > { %v938_v18 = vpop.f32.mrf.mxu0  ;;  %v946_v20 = vpop.f32.mrf.mxu1 }
 0x143   : > { %v671_v21 = vpop.f32.mrf.mxu0 }
 0x144   : > { %v672_v22 = vadd.f32 %v912_v19, %v671_v21 }
 0x145   : > { %v953_v23 = vpop.f32.mrf.mxu0 }
 0x146   : > { %v917_v24 = vmul.f32 -1.442695, %v672_v22 }
 0x147   : > { %v674_v25 = vpop.f32.mrf.mxu0 }
 0x148   : > { %1065 = vpow2.f32 %v917_v24 }
 0x149   : > { %v954_v26 = vpop.f32.mrf.mxu0 }
 0x14d   : > { %v1064_v27 = vpop.eup %1063 }
 0x14e   : > { %v681_v29 = vadd.f32 1.0, %v1064_v27 }
 0x150   : > { %1067 = vrcp.f32 %v681_v29 }
 0x151   : > { %1069 = vtanh.f32 %v546_v30 }
 0x155   : > { %v1066_v31 = vpop.eup %1065 }
 0x156   : > { %v687_v32 = vadd.f32 1.0, %v1066_v31 }
 0x158   : > { %1071 = vrcp.f32 %v687_v32 }
 0x15d   : > { %v1068_v33 = vpop.eup %1067 }
 0x15e   : > { %v1070_v35 = vpop.eup %1069 }
 0x15f   : > { %v692_v38 = vmul.f32 %v1070_v35, %v1068_v33 }
 0x165   : > { %v1072_v36 = vpop.eup %1071 }
 0x166   : > { %v691_v37 = vmul.f32 %v1072_v36, %v690_v34 }
 0x168   : > { %v693_v39 = vadd.f32 %v692_v38, %v691_v37 }
 0x16a   : > { %694 = vst.msk [vmem:[%s471_s24] sm:$0xff] %vm507_vm1, %v693_v39 }
 0x16b   : > { %1220 = shalt.err (!%p1217_p2)
}
 0x16c   : > { %s1221_s19 = scalar_lea.hbm %s708_s22, 128  ;;  %s1225_s13 = scalar_lea.hbm %s1589_s8, 256 }
 0x16d   : > { %p1222_p4 = scmp.ne.s32.totalorder %s708_s22, %s1221_s19  ;;  %p1226_p7 = scmp.lt.s32.totalorder %s708_s22, %s1589_s8 }
 0x16e   : > { %p1227_p6 = scmp.lt.s32.totalorder %s1225_s13, %s1221_s19 }
 0x16f   : > { %p1223_p1 = pnand %p1222_p4, %p1452_p5 }
 0x170   : > { %p1228_p12 = por %p1227_p6, %p1226_p7 }
 0x171   : > { %p1224_p8 = pneg %p1223_p1 }
 0x173   : > { %p1229_p0 = pnand %p1228_p12, %p1224_p8 }
 0x175   : > { %1232 = shalt.err (!%p1229_p0)
}
 0x176   : > { %971 = dma.vmem_to_hbm [thread:$0]  (%p1452_p5), %s711_s17, 128, %s708_s22, %s696_s23  }
 0x177 PF: > { %s1616_s4 = sld [smem:[#allocation17_spill]]  ;;  %s722_s14 = sand.u32 1, %s1279_s27  }
 0x178   : > { %p1618_p10 = scmp.ge.s32.totalorder %s1299_s10, 2  ;;  %s723_s16 = scalar_lea.sflag [#allocation4], %s722_s14 }
 0x17d   : > { %p1617_p3 = scmp.ne.s32.totalorder %s1616_s4, 0 }
 0x17f   : > { %p991_p11 = pnand %p1618_p10, %p1617_p3 }
 0x181   : > { %p992_p9 = pneg %p991_p11 }
 0x183   : > { %1274 = dma.done.wait (%p992_p9), %s723_s16, 128  }
 0x184   : > { %1276 = vsyncadd (%p992_p9), %s723_s16, 4294967168  ;;  %s28_s10 = sadd.s32 1, %s1299_s10   ;;  %s1619_s18 = sld [smem:[#allocation18_spill]] }
 0x185   : > { %p25_p13 = scmp.ge.s32.totalorder %s28_s10, 4   ;;  %s1620_s27 = smov %s1283_s28 }
 0x186   : > { %s1621_s28 = smov %s1287_s29  ;;  %s1622_s29 = smov %s1464_s25 }
 0x187   : > { %s1623_s30 = smov %s1295_s9  ;;  %27 = sbr.rel (!%p25_p13) target bundleno = 14 (0xe), region = 134 }
 0x18a   : > { %s1624_s9 = smov %s1619_s18 }
 0x18c   :  { %728 = vsyncpa [#allocation3], 1 }
 0x18d   :  { %730 = vsyncpa [#allocation3 + $0x1], 1 }
 0x18e   :  { %731 = vsyncpa [#allocation6], 1 }
 0x18f   :  { %733 = vsyncpa [#allocation6 + $0x1], 1 }
 0x190   :  { %734 = vsyncpa [#allocation9], 1 }
 0x191   :  { %735 = vsyncpa [#allocation4], 1 }
 0x192   :  { %737 = vsyncpa [#allocation4 + $0x1], 1 }

</bundles_post_ra>
